<compile_context>
chip_gen: v7x
topology: tpu7x:2x2x1
jax: 0.10.0
libtpu: 0.0.40
codegen_flags: <defaults>
</compile_context>

<pallas_src>
import functools

import jax
import jax.numpy as jnp
from jax.experimental import pallas as pl
from jax.experimental.pallas import tpu as pltpu

_LANES = 128
_SUBLANES = 8
_MAX_BLOCK_ROWS = 1024  # 1024 x 128 x 4 B = 512 KiB per f32 input buffer


def _round_up(x, m):
    return ((x + m - 1) // m) * m


def _edl_loss_kernel(out0_ref, out1_ref, y_ref, partial_ref, *,
                     n_valid, n_padded, block_rows, hard_targets):
    # Upcast in-kernel (inputs may arrive as bf16/fp16 to halve DMA bytes).
    x0 = out0_ref[...].astype(jnp.float32)
    x1 = out1_ref[...].astype(jnp.float32)
    y = y_ref[...].astype(jnp.float32)

    # exp evidence with clamp, alpha = evidence + 1
    a0 = jnp.exp(jnp.clip(x0, -10.0, 10.0)) + 1.0
    a1 = jnp.exp(jnp.clip(x1, -10.0, 10.0)) + 1.0
    log_s = jnp.log(a0 + a1)

    if hard_targets:
        # y is 0/1  =>  y*log(a0) + (1-y)*log(a1) == log(where(y, a0, a1)).
        # Drops one log per pair (this kernel is EUP-bound).
        per_pair = log_s - jnp.log(jnp.where(y > 0.5, a0, a1))
    else:
        # Exact general (soft-label) form, identical to the PyTorch module.
        per_pair = log_s - (y * jnp.log(a0) + (1.0 - y) * jnp.log(a1))

    # Zero out the padded tail so it contributes nothing to the sum.
    if n_valid < n_padded:
        base = pl.program_id(0) * (block_rows * _LANES)
        ridx = jax.lax.broadcasted_iota(jnp.int32, per_pair.shape, 0)
        lidx = jax.lax.broadcasted_iota(jnp.int32, per_pair.shape, 1)
        gidx = base + ridx * _LANES + lidx
        per_pair = jnp.where(gidx < n_valid, per_pair, 0.0)

    # Lane-dense (8, 128) per-tile partial sum (cheap vreg adds; no XLU needed).
    tile_partial = jnp.sum(
        per_pair.reshape(block_rows // _SUBLANES, _SUBLANES, _LANES), axis=0)
    partial_ref[...] = tile_partial[None, :, :]


class EvidenceLoss:
    """JAX/Pallas port of nets/criterion.py::EvidenceLoss (exp / log / uncertain)."""

    def __init__(self, num_classes, evidence="exp", uncertain=True,
                 loss_type="log", hard_targets=True):
        self.num_classes = num_classes
        self.evidence = evidence
        self.uncertain = uncertain
        self.loss_type = loss_type
        self.hard_targets = hard_targets  # True => one-log-fewer select path
        self.eps = 1e-10  # stored for parity; the PyTorch 'log' path never uses it
        if not (evidence == "exp" and uncertain and loss_type == "log"):
            # TODO(synk): only the default ('exp', uncertain=True, 'log') branch is
            # implemented as a Pallas kernel ('relu'/'softplus'/'bce'/softmax are not).
            raise NotImplementedError

    def __call__(self, output, target, fore_only=False):
        # fore_only is accepted for API parity; the PyTorch 'log' path ignores it.
        assert output.shape[-1] == 2
        assert output.shape[:-1] == target.shape
        C = output.shape[-2]
        M = int(target.size // C)  # number of rows the mean is taken over
        n = M * C                  # number of (fore, back) evidence pairs

        # De-interleave the pair axis (fused by XLA with the reshape/pad below);
        # keep native dtype — upcast happens inside the kernel.
        out0 = output[..., 0].reshape(n)
        out1 = output[..., 1].reshape(n)
        y = target.reshape(n)
        if not jnp.issubdtype(y.dtype, jnp.floating):
            y = y.astype(jnp.float32)

        # Lane-dense tiling: (padded_rows, 128), padded_rows a multiple of block_rows.
        rows = -(-n // _LANES)
        block_rows = min(_MAX_BLOCK_ROWS, _round_up(rows, _SUBLANES))
        padded_rows = _round_up(rows, block_rows)
        pad = padded_rows * _LANES - n
        if pad:
            out0 = jnp.pad(out0, (0, pad))
            out1 = jnp.pad(out1, (0, pad))
            y = jnp.pad(y, (0, pad))
        out0 = out0.reshape(padded_rows, _LANES)
        out1 = out1.reshape(padded_rows, _LANES)
        y = y.reshape(padded_rows, _LANES)

        grid = padded_rows // block_rows
        kernel = functools.partial(
            _edl_loss_kernel,
            n_valid=n,
            n_padded=padded_rows * _LANES,
            block_rows=block_rows,
            hard_targets=self.hard_targets,
        )

        in_spec = pl.BlockSpec((block_rows, _LANES), lambda i: (i, 0))
        partials = pl.pallas_call(
            kernel,
            out_shape=jax.ShapeDtypeStruct((grid, _SUBLANES, _LANES), jnp.float32),
            grid_spec=pltpu.PrefetchScalarGridSpec(
                num_scalar_prefetch=0,
                grid=(grid,),
                in_specs=[in_spec, in_spec, in_spec],
                out_specs=pl.BlockSpec((1, _SUBLANES, _LANES),
                                       lambda i: (i, 0, 0)),
            ),
            compiler_params=pltpu.CompilerParams(
                dimension_semantics=("parallel",),  # independent tiles -> dual-TC on v7x
                vmem_limit_bytes=32 * 1024 * 1024,  # safe on v5e/v6e/v7x; >> 3 MiB used
            ),
        )(out0, out1, y)

        # Tiny final reduction + mean over rows (compile-time 1/M multiply).
        return jnp.sum(partials) * (1.0 / M)


def _reference_loss(output, target):
    """Pure-JAX reference mirroring the PyTorch forward, for sanity checking."""
    C = output.shape[-2]
    y = target
    gt = jnp.stack((y, 1.0 - y), axis=-1)                       # [..., C, 2]
    alpha = jnp.exp(jnp.clip(output, -10.0, 10.0)) + 1.0        # [..., C, 2]
    gt2 = gt.reshape(-1, 2)
    al2 = alpha.reshape(-1, 2)
    S = jnp.sum(al2, axis=1, keepdims=True)
    p = jnp.log(S) - jnp.log(al2)
    loss = jnp.sum(gt2 * p, axis=1, keepdims=True)
    return jnp.mean(jnp.sum(loss.reshape(-1, C), axis=-1))


if __name__ == "__main__":
    key = jax.random.PRNGKey(0)

    # --- small shape, f32, single tile -------------------------------------
    B, T, C = 2, 8, 4
    k1, k2, k3, k4 = jax.random.split(key, 4)
    output = jax.random.normal(k1, (B, T, C, 2), dtype=jnp.float32)
    target = (jax.random.uniform(k2, (B, T, C)) > 0.5).astype(jnp.float32)

    crit = EvidenceLoss(num_classes=C, evidence="exp", uncertain=True, loss_type="log")
    loss = jax.block_until_ready(crit(output, target))
    ref = jax.block_until_ready(_reference_loss(output, target))
    assert jnp.allclose(loss, ref, rtol=1e-5, atol=1e-5), (loss, ref)

    # --- moderate shape, bf16 input, multi-tile grid (exercises masking) ----
    B2, T2, C2 = 2, 520, 128
    output2 = jax.random.normal(k3, (B2, T2, C2, 2), dtype=jnp.bfloat16)
    target2 = (jax.random.uniform(k4, (B2, T2, C2)) > 0.5).astype(jnp.float32)

    crit2 = EvidenceLoss(num_classes=C2)
    loss2 = jax.block_until_ready(crit2(output2, target2))
    ref2 = jax.block_until_ready(
        _reference_loss(output2.astype(jnp.float32), target2))
    assert jnp.allclose(loss2, ref2, rtol=1e-4, atol=1e-4), (loss2, ref2)

    print("KERNEL_OK")
</pallas_src>

<mosaic_0001>
module attributes {stable_mosaic.version = 11 : i64} {
  func.func @_edl_loss_kernel(%arg0: i32, %arg1: memref<8x128xf32, #tpu.memory_space<vmem>>, %arg2: memref<8x128xf32, #tpu.memory_space<vmem>>, %arg3: memref<8x128xf32, #tpu.memory_space<vmem>>, %arg4: memref<1x8x128xf32, #tpu.memory_space<vmem>>) attributes {dimension_semantics = [#tpu.dimension_semantics<parallel>], iteration_bounds = array<i64: 1>, scalar_prefetch = 0 : i64, scratch_operands = 0 : i64, tpu.core_type = #tpu.core_type<tc>, window_params = [{transform_indices = @transform_0, window_bounds = array<i64: 8, 128>}, {transform_indices = @transform_1, window_bounds = array<i64: 8, 128>}, {transform_indices = @transform_2, window_bounds = array<i64: 8, 128>}, {transform_indices = @transform_3, window_bounds = array<i64: 1, 8, 128>}]} {
    %c0 = arith.constant 0 : index
    %c0_0 = arith.constant 0 : index
    %0 = vector.load %arg1[%c0, %c0_0] : memref<8x128xf32, #tpu.memory_space<vmem>>, vector<8x128xf32>
    %c0_1 = arith.constant 0 : index
    %c0_2 = arith.constant 0 : index
    %1 = vector.load %arg2[%c0_1, %c0_2] : memref<8x128xf32, #tpu.memory_space<vmem>>, vector<8x128xf32>
    %c0_3 = arith.constant 0 : index
    %c0_4 = arith.constant 0 : index
    %2 = vector.load %arg3[%c0_3, %c0_4] : memref<8x128xf32, #tpu.memory_space<vmem>>, vector<8x128xf32>
    %cst = arith.constant -1.000000e+01 : f32
    %cst_5 = arith.constant 1.000000e+01 : f32
    %3 = vector.broadcast %cst : f32 to vector<8x128xf32>
    %4 = arith.maximumf %3, %0 : vector<8x128xf32>
    %5 = vector.broadcast %cst_5 : f32 to vector<8x128xf32>
    %6 = arith.minimumf %5, %4 : vector<8x128xf32>
    %7 = math.exp %6 : vector<8x128xf32>
    %cst_6 = arith.constant 1.000000e+00 : f32
    %8 = vector.broadcast %cst_6 : f32 to vector<8x128xf32>
    %9 = arith.addf %7, %8 : vector<8x128xf32>
    %cst_7 = arith.constant -1.000000e+01 : f32
    %cst_8 = arith.constant 1.000000e+01 : f32
    %10 = vector.broadcast %cst_7 : f32 to vector<8x128xf32>
    %11 = arith.maximumf %10, %1 : vector<8x128xf32>
    %12 = vector.broadcast %cst_8 : f32 to vector<8x128xf32>
    %13 = arith.minimumf %12, %11 : vector<8x128xf32>
    %14 = math.exp %13 : vector<8x128xf32>
    %cst_9 = arith.constant 1.000000e+00 : f32
    %15 = vector.broadcast %cst_9 : f32 to vector<8x128xf32>
    %16 = arith.addf %14, %15 : vector<8x128xf32>
    %17 = arith.addf %9, %16 : vector<8x128xf32>
    %18 = math.log %17 : vector<8x128xf32>
    %cst_10 = arith.constant 5.000000e-01 : f32
    %19 = vector.broadcast %cst_10 : f32 to vector<8x128xf32>
    %20 = arith.cmpf ogt, %2, %19 : vector<8x128xf32>
    %21 = arith.select %20, %9, %16 : vector<8x128xi1>, vector<8x128xf32>
    %22 = math.log %21 : vector<8x128xf32>
    %23 = arith.subf %18, %22 : vector<8x128xf32>
    %c1024_i32 = arith.constant 1024 : i32
    %24 = arith.muli %arg0, %c1024_i32 : i32
    %25 = tpu.iota {dimensions = array<i32: 0>} : vector<8x128xi32>
    %26 = tpu.iota {dimensions = array<i32: 1>} : vector<8x128xi32>
    %c128_i32 = arith.constant 128 : i32
    %27 = vector.broadcast %c128_i32 : i32 to vector<8x128xi32>
    %28 = arith.muli %25, %27 : vector<8x128xi32>
    %29 = vector.broadcast %24 : i32 to vector<8x128xi32>
    %30 = arith.addi %29, %28 : vector<8x128xi32>
    %31 = arith.addi %30, %26 : vector<8x128xi32>
    %c64_i32 = arith.constant 64 : i32
    %32 = vector.broadcast %c64_i32 : i32 to vector<8x128xi32>
    %33 = arith.cmpi slt, %31, %32 : vector<8x128xi32>
    %cst_11 = arith.constant 0.000000e+00 : f32
    %34 = vector.broadcast %cst_11 : f32 to vector<8x128xf32>
    %35 = arith.select %33, %23, %34 : vector<8x128xi1>, vector<8x128xf32>
    %36 = vector.shape_cast %35 : vector<8x128xf32> to vector<1x8x128xf32>
    %cst_12 = arith.constant dense<0.000000e+00> : vector<8x128xf32>
    %37 = vector.multi_reduction <add>, %36, %cst_12 [0] : vector<1x8x128xf32> to vector<8x128xf32>
    %38 = vector.shape_cast %37 : vector<8x128xf32> to vector<1x8x128xf32>
    %c0_13 = arith.constant 0 : index
    %c0_14 = arith.constant 0 : index
    %c0_15 = arith.constant 0 : index
    %39 = vector.load %arg4[%c0_13, %c0_14, %c0_15] : memref<1x8x128xf32, #tpu.memory_space<vmem>>, vector<1x8x128xf32>
    tpu.vector_store %arg4[%c0_13, %c0_14, %c0_15], %38 {strides = array<i32>} : memref<1x8x128xf32, #tpu.memory_space<vmem>>, vector<1x8x128xf32>,
    return
  }
  func.func @transform_0(%arg0: i32) -> (i32, i32) {
    %c0_i32 = arith.constant 0 : i32
    %c0_i32_0 = arith.constant 0 : i32
    return %arg0, %c0_i32 : i32, i32
  }
  func.func @transform_1(%arg0: i32) -> (i32, i32) {
    %c0_i32 = arith.constant 0 : i32
    %c0_i32_0 = arith.constant 0 : i32
    return %arg0, %c0_i32 : i32, i32
  }
  func.func @transform_2(%arg0: i32) -> (i32, i32) {
    %c0_i32 = arith.constant 0 : i32
    %c0_i32_0 = arith.constant 0 : i32
    return %arg0, %c0_i32 : i32, i32
  }
  func.func @transform_3(%arg0: i32) -> (i32, i32, i32) {
    %c0_i32 = arith.constant 0 : i32
    %c0_i32_0 = arith.constant 0 : i32
    %c0_i32_1 = arith.constant 0 : i32
    return %arg0, %c0_i32, %c0_i32_0 : i32, i32, i32
  }
}

</mosaic_0001>

<bundles_post_ra>
// kernel: tpu_custom_call.1
= control target key start
LH: loop header
LB: loop body
LE: loop exit
PB: predicated region body
PF: predicated region fallthrough
CT: control target
= control target key end

     0   :  { %8 = vsyncpa [#allocation3], 0  ;;  %s280_s0 = inlined_call_operand.hbm [shape: f32[8,128], index: 0, kind: input, shape index: {}]   ;;  %s281_s1 = inlined_call_operand.hbm [shape: f32[8,128], index: 1, kind: input, shape index: {}]   ;;  %s282_s2 = inlined_call_operand.hbm [shape: f32[8,128], index: 2, kind: input, shape index: {}]   ;;  %s283_s3 = inlined_call_operand.hbm [shape: f32[1,8,128], index: 3, kind: output, shape index: {}]  }
   0x1   :  { %9 = vsyncpa [#allocation6], 0 }
   0x2   :  { %10 = vsyncpa [#allocation4], 0  ;;  %s208_s12 = smov [#allocation5]   ;;  %s209_s14 = smov [#allocation2]  }
   0x3   :  { %s27_s13 = sshll.u32 %s208_s12, 4  ;;  %s17_s15 = sshll.u32 %s209_s14, 4  ;;  %s28_s13 = int_to_ptr.vmem [resolvable:$true] %s27_s13  ;;  %s18_s15 = int_to_ptr.vmem [resolvable:$true] %s17_s15 }
   0x4   :  { %s114_s18 = scalar_lea.hbm %s281_s1, 128 }
   0x5   :  { %p115_p0 = scmp.ne.s32.totalorder %s281_s1, %s114_s18  ;;  %p118_p1 = scmp.lt.u32.totalorder %s114_s18, %s281_s1 }
   0x7   :  { %p120_p2 = pnand %p118_p1, %p115_p0 }
   0x9   :  { %123 = shalt.err (!%p120_p2)
}
   0xa   :  { %s124_s23 = scalar_lea.vmem %s28_s13, 128  ;;  %p129_p4 = scmp.lt.s32.totalorder %s28_s13, %s28_s13 }
   0xb   :  { %p125_p3 = scmp.ne.s32.totalorder %s28_s13, %s124_s23  ;;  %p130_p5 = scmp.lt.s32.totalorder %s124_s23, %s124_s23 }
   0xd   :  { %p131_p6 = por %p130_p5, %p129_p4 }
   0xf   :  { %p132_p7 = pnand %p131_p6, %p125_p3 }
  0x11   :  { %135 = shalt.err (!%p132_p7)
}
  0x12   :  { %30 = dma.hbm_to_vmem [thread:$0]  %s281_s1, 128, %s28_s13, [#allocation6]  }
  0x13   :  { %s136_s28 = scalar_lea.hbm %s280_s0, 128 }
  0x14   :  { %p137_p8 = scmp.ne.s32.totalorder %s280_s0, %s136_s28  ;;  %p140_p9 = scmp.lt.u32.totalorder %s136_s28, %s280_s0 }
  0x16   :  { %p142_p10 = pnand %p140_p9, %p137_p8 }
  0x18   :  { %145 = shalt.err (!%p142_p10)
}
  0x19   :  { %s146_s6 = scalar_lea.vmem %s18_s15, 128  ;;  %p151_p12 = scmp.lt.s32.totalorder %s18_s15, %s18_s15 }
  0x1a   :  { %p147_p11 = scmp.ne.s32.totalorder %s18_s15, %s146_s6  ;;  %p152_p13 = scmp.lt.s32.totalorder %s146_s6, %s146_s6 }
  0x1c   :  { %p153_p0 = por %p152_p13, %p151_p12 }
  0x1e   :  { %p154_p1 = pnand %p153_p0, %p147_p11 }
  0x20   :  { %157 = shalt.err (!%p154_p1)
}
  0x21   :  { %20 = dma.hbm_to_vmem [thread:$0]  %s280_s0, 128, %s18_s15, [#allocation3]  }
  0x22   :  { %s210_s8 = smov [#allocation7]   ;;  %s158_s12 = scalar_lea.hbm %s282_s2, 128 }
  0x23   :  { %s37_s9 = sshll.u32 %s210_s8, 4  ;;  %p159_p2 = scmp.ne.s32.totalorder %s282_s2, %s158_s12  ;;  %s38_s9 = int_to_ptr.vmem [resolvable:$true] %s37_s9 }
  0x24   :  { %p162_p3 = scmp.lt.u32.totalorder %s158_s12, %s282_s2 }
  0x26   :  { %p164_p4 = pnand %p162_p3, %p159_p2 }
  0x28   :  { %167 = shalt.err (!%p164_p4)
}
  0x29   :  { %s168_s18 = scalar_lea.vmem %s38_s9, 128  ;;  %p173_p6 = scmp.lt.s32.totalorder %s38_s9, %s38_s9 }
  0x2a   :  { %p169_p5 = scmp.ne.s32.totalorder %s38_s9, %s168_s18  ;;  %p174_p7 = scmp.lt.s32.totalorder %s168_s18, %s168_s18 }
  0x2c   :  { %p175_p8 = por %p174_p7, %p173_p6 }
  0x2e   :  { %p176_p9 = pnand %p175_p8, %p169_p5 }
  0x30   :  { %179 = shalt.err (!%p176_p9)
}
  0x31   :  { %40 = dma.hbm_to_vmem [thread:$0]  %s282_s2, 128, %s38_s9, [#allocation6]  }
  0x32   :  { %202 = dma.done.wait [#allocation3], 128  }
  0x33   :  { %203 = vsyncadd [#allocation3], 4294967168 }
  0x34   :  { %204 = dma.done.wait [#allocation6], 256  }
  0x35   :  { %205 = vsyncadd [#allocation6], 4294967040  ;;  %v50_v0 = vld [vmem:[#allocation2] sm:$0xff]  ;;  %v51_v1 = vld [vmem:[#allocation5] sm:$0xff]  ;;  %v72_v11 = vlaneseq  ;;  %s211_s2 = smov [#allocation8]  }
  0x36   :  { %v100_v2 = vclamps-f32 %v50_v0, 10.0  ;;  %v101_v3 = vclamps-f32 %v51_v1, 10.0  ;;  %v52_v6 = vld [vmem:[#allocation7] sm:$0xff]  ;;  %s90_s19 = sshll.u32 %s211_s2, 4  ;;  %s91_s19 = int_to_ptr.vmem [resolvable:$true] %s90_s19 }
  0x37   :  { %vm66_vm0 = vcmp.gt.f32.partialorder %v52_v6, 0.5  ;;  %v73_v14 = vshrl.u32 %v72_v11, 7  ;;  %v75_v15 = vand.u32 127, %v72_v11  ;;  %s180_s20 = scalar_lea.vmem %s91_s19, 128  ;;  %p185_p11 = scmp.lt.s32.totalorder %s91_s19, %s91_s19 }
  0x38   :  { %v55_v4 = vmul.f32 1.442695, %v100_v2  ;;  %v60_v5 = vmul.f32 1.442695, %v101_v3  ;;  %p181_p10 = scmp.ne.s32.totalorder %s91_s19, %s180_s20  ;;  %p186_p12 = scmp.lt.s32.totalorder %s180_s20, %s180_s20 }
  0x39   :  { %v76_v16 = vmul.u32 128, %v73_v14 }
  0x3a   :  { %106 = vpow2.f32 %v55_v4  ;;  %p187_p13 = por %p186_p12, %p185_p11 }
  0x3b   :  { %108 = vpow2.f32 %v60_v5  ;;  %v79_v17 = vadd.s32 %v76_v16, %v75_v15 }
  0x3c   :  { %p188_p0 = pnand %p187_p13, %p181_p10 }
  0x3d   :  { %vm80_vm1 = vcmp.lt.s32.totalorder %v79_v17, 64 }
  0x44   :  { %v107_v7 = vpop.eup %106 }
  0x45   :  { %v109_v8 = vpop.eup %108  ;;  %v57_v9 = vadd.f32 1.0, %v107_v7 }
  0x46   :  { %v62_v10 = vadd.f32 1.0, %v109_v8 }
  0x48   :  { %v63_v12 = vadd.f32 %v62_v10, %v57_v9  ;;  %v67_v13 = vsel %vm66_vm0, %v57_v9, %v62_v10 }
  0x49   :  { %110 = vlog2.f32 %v67_v13 }
  0x4a   :  { %112 = vlog2.f32 %v63_v12 }
  0x53   :  { %v111_v18 = vpop.eup %110 }
  0x54   :  { %v113_v19 = vpop.eup %112  ;;  %v69_v20 = vmul.f32 0.6931472, %v111_v18 }
  0x55   :  { %v65_v21 = vmul.f32 0.6931472, %v113_v19 }
  0x57   :  { %v70_v22 = vsub.f32 %v65_v21, %v69_v20 }
  0x59   :  { %v81_v23 = vsel %vm80_vm1, %v70_v22, 0.0 }
  0x5a   :  { %83 = vst [vmem:[#allocation8] sm:$0xff] %v81_v23 }
  0x5b   :  { %191 = shalt.err (!%p188_p0)
}
  0x5c   :  { %s192_s23 = scalar_lea.hbm %s283_s3, 128 }
  0x5d   :  { %p193_p1 = scmp.ne.s32.totalorder %s283_s3, %s192_s23  ;;  %p196_p2 = scmp.lt.u32.totalorder %s192_s23, %s283_s3 }
  0x5f   :  { %p198_p3 = pnand %p196_p2, %p193_p1 }
  0x61   :  { %201 = shalt.err (!%p198_p3)
}
  0x62   :  { %93 = dma.vmem_to_hbm [thread:$0]  %s91_s19, 128, %s283_s3, [#allocation4]  }
  0x63   :  { %206 = dma.done.wait [#allocation4], 128  }
  0x64   :  { %207 = vsyncadd [#allocation4], 4294967168 }
  0x65   :  { %97 = vsyncpa [#allocation3], 1 }
  0x66   :  { %98 = vsyncpa [#allocation6], 1 }
  0x67   :  { %99 = vsyncpa [#allocation4], 1 }

</bundles_post_ra>
